<compile_context>
chip_gen: v5e
topology: v5e:2x2
jax: 0.10.0
libtpu: 0.0.40
codegen_flags: <defaults>
</compile_context>

<pallas_src>
import functools

import jax
import jax.numpy as jnp
from jax.experimental import pallas as pl
from jax.experimental.pallas import tpu as pltpu

_MIB = 1024 * 1024


# ----------------------------- kernels ------------------------------------


def _normalize_f32(x, eps):
    xf = x.astype(jnp.float32)
    mean = jnp.mean(xf, axis=-1, keepdims=True)            # XLU reduction
    xzm = xf - mean
    var = jnp.mean(xzm * xzm, axis=-1, keepdims=True)      # biased variance
    return xzm * jax.lax.rsqrt(var + eps)                  # eps inside sqrt (EUP)


def _ln_kernel_affine(x_ref, w_ref, b_ref, o_ref, *, eps, packed_affine):
    # x_ref: (TILE_ROWS, H), w_ref/b_ref: (1, H) resident in VMEM, o_ref: (TILE_ROWS, H)
    y = _normalize_f32(x_ref[...], eps)
    if packed_affine:
        # bf16 I/O: binding resource is the 4-wide VALU; packed bf16 ops
        # process 2x elements per op -> do the scale/affine in bf16.
        y = y.astype(o_ref.dtype)
        o_ref[...] = w_ref[...].astype(o_ref.dtype) * y + b_ref[...].astype(o_ref.dtype)
    else:
        y = w_ref[...].astype(jnp.float32) * y + b_ref[...].astype(jnp.float32)
        o_ref[...] = y.astype(o_ref.dtype)


def _ln_kernel_plain(x_ref, o_ref, *, eps):
    o_ref[...] = _normalize_f32(x_ref[...], eps).astype(o_ref.dtype)


# --------------------------- budget / tiling --------------------------------


def _round_up(n, m):
    return ((n + m - 1) // m) * m


def _align_down(n, m):
    return (n // m) * m


def _tpu_generation():
    """Best-effort chip generation: 'v5', 'v6', 'v7' or '' (unknown)."""
    try:
        kind = jax.devices()[0].device_kind.lower()
    except Exception:
        return ""
    if "v7" in kind or "7x" in kind:
        return "v7"
    if "v6" in kind:
        return "v6"
    if "v5" in kind:
        return "v5"
    return ""


def _vmem_limit_bytes(gen):
    """Scoped-VMEM limit to request, keyed off the chip generation."""
    cap = 0
    try:
        info = pltpu.get_tpu_info()
        cap = int(getattr(info, "vmem_capacity_bytes", 0) or 0)
    except Exception:
        cap = 0
    if gen == "v7":
        # 64 MiB per TensorCore; capacity queries may report per-chip numbers,
        # so clamp explicitly to a per-TC budget so large tiles still compile.
        return 44 * _MIB
    if cap <= 0:
        # Unknown query result: v5e/v6e have 128 MiB of VMEM; otherwise stay
        # conservative.
        cap = 128 * _MIB if gen in ("v5", "v6") else 64 * _MIB
    if cap <= 64 * _MIB:
        return min(cap * 3 // 4, 44 * _MIB)
    return min(cap * 3 // 4, 96 * _MIB)


def _prefer_even_split(rows, tile, row_align):
    """Round `tile` down (by at most ~25%) so it divides `rows` evenly, or at
    least leaves a tail block >= half a tile (padded tails still DMA/compute a
    full tile)."""
    if rows <= tile:
        return tile
    lo = max(row_align, _align_down(tile * 3 // 4, row_align))
    for t in range(tile, lo - 1, -row_align):
        if rows % t == 0:
            return t
    for t in range(tile, lo - 1, -row_align):
        rem = rows % t
        if rem == 0 or rem >= t // 2:
            return t
    return tile


def _select_tile_rows(rows, H, itemsize, row_align, min_steps, vmem_limit):
    """Largest row tile that fits the VMEM budget while keeping >= min_steps
    grid steps (when rows allow)."""
    if rows <= row_align:
        return rows
    # Footprint per block row: double-buffered input + output blocks in the
    # I/O dtype, plus ~3 live f32 temporaries per element inside the body
    # (xf across both reduction passes, xzm, result).
    bytes_per_row = H * (4 * itemsize + 3 * 4)
    budget = int(vmem_limit * 0.85)
    cap_rows = max(row_align, _align_down(budget // bytes_per_row, row_align))
    cap_rows = min(cap_rows, 1024)              # bandwidth plateaus by 512-1024 rows
    tile = min(cap_rows, _round_up(rows, row_align))
    # Keep >= min_steps steps so the pipeline has something to overlap
    # (>= 4 per TensorCore on v7x), whenever rows allow it.
    if rows >= min_steps * row_align:
        per_step = max(row_align, _align_down(rows // min_steps, row_align))
        tile = min(tile, per_step)
    return _prefer_even_split(rows, tile, row_align)


# ------------------------------ wrapper -------------------------------------


def esm1_layernorm(x, weight=None, bias=None, *, hidden_size, eps=1e-12,
                   affine=True, tile_rows=None):
    """TF-style layernorm over the trailing `hidden_size` dims of x."""
    if isinstance(hidden_size, int):
        hidden_size = (hidden_size,)
    hidden_size = tuple(hidden_size)
    nh = len(hidden_size)
    assert x.shape[-nh:] == hidden_size, (
        f"trailing dims {x.shape[-nh:]} != hidden_size {hidden_size}")

    H = 1
    for h in hidden_size:
        H *= h
    rows = 1
    for d in x.shape[:-nh]:
        rows *= d

    # Lane-sparse guard: for tiny H every store is a masked vst wasting >75%
    # of each vreg/DMA beat -> use the pure-JAX path instead.
    if H < 128 or rows == 0:
        return _reference_layernorm(x, weight, bias, hidden_size, eps, affine)

    x2d = x.reshape(rows, H)
    itemsize = x.dtype.itemsize
    row_align = max(8, 32 // itemsize)   # sublane packing: 8 f32 / 16 bf16 / 32 i8

    gen = _tpu_generation()
    vmem_limit = _vmem_limit_bytes(gen)
    min_steps = 8 if gen == "v7" else 4   # >= 4 steps per TensorCore on v7x

    if tile_rows is None:
        tile_rows = _select_tile_rows(rows, H, itemsize, row_align,
                                      min_steps, vmem_limit)
    else:
        tile_rows = min(int(tile_rows), rows)

    grid = (pl.cdiv(rows, tile_rows),)

    x_spec = pl.BlockSpec((tile_rows, H), lambda i: (i, 0))
    o_spec = pl.BlockSpec((tile_rows, H), lambda i: (i, 0))

    param_bytes = 2 * H * itemsize if affine else 0
    cost = pl.CostEstimate(
        flops=7 * rows * H,
        transcendentals=rows,                              # one rsqrt per row
        bytes_accessed=2 * rows * H * itemsize + param_bytes,
    )
    cparams = pltpu.CompilerParams(
        dimension_semantics=("parallel",),
        vmem_limit_bytes=vmem_limit,
    )

    if affine:
        packed_affine = (x.dtype == jnp.bfloat16)
        kernel = functools.partial(_ln_kernel_affine, eps=eps,
                                   packed_affine=packed_affine)
        # weight/bias live untiled in VMEM: one DMA for the whole grid instead
        # of one descriptor per step.
        param_spec = pl.BlockSpec(memory_space=pltpu.MemorySpace.VMEM)
        in_specs = [x_spec, param_spec, param_spec]
        args = (x2d,
                weight.reshape(1, H).astype(x.dtype),
                bias.reshape(1, H).astype(x.dtype))
    else:
        kernel = functools.partial(_ln_kernel_plain, eps=eps)
        in_specs = [x_spec]
        args = (x2d,)

    out2d = pl.pallas_call(
        kernel,
        out_shape=jax.ShapeDtypeStruct((rows, H), x.dtype),
        grid_spec=pltpu.PrefetchScalarGridSpec(
            num_scalar_prefetch=0,
            grid=grid,
            in_specs=in_specs,
            out_specs=o_spec,
        ),
        compiler_params=cparams,
        cost_estimate=cost,
    )(*args)

    return out2d.reshape(x.shape)


# ------------------------------ reference -----------------------------------


def _reference_layernorm(x, weight, bias, hidden_size, eps, affine):
    """Pure-JAX reference mirroring the PyTorch forward exactly."""
    if isinstance(hidden_size, int):
        hidden_size = (hidden_size,)
    dims = tuple(-(i + 1) for i in range(len(hidden_size)))
    x32 = x.astype(jnp.float32)
    means = jnp.mean(x32, axis=dims, keepdims=True)
    x_zm = x32 - means
    variances = jnp.mean(x_zm ** 2, axis=dims, keepdims=True)
    y = x_zm / jnp.sqrt(variances + eps)
    if affine:
        y = weight.astype(jnp.float32) * y + bias.astype(jnp.float32)
    return y.astype(x.dtype)


# ------------------------------- self-test ----------------------------------


if __name__ == "__main__":
    key = jax.random.PRNGKey(0)
    eps = 1e-12

    # main case: batch=2, seq=8, hidden=128 (lane-dense Pallas path, f32)
    batch, seq, hidden = 2, 8, 128
    kx, kw, kb = jax.random.split(key, 3)
    x = jax.random.normal(kx, (batch, seq, hidden), dtype=jnp.float32)
    weight = jnp.ones((hidden,), jnp.float32) \
        + 0.1 * jax.random.normal(kw, (hidden,), jnp.float32)
    bias = jnp.zeros((hidden,), jnp.float32) \
        + 0.1 * jax.random.normal(kb, (hidden,), jnp.float32)

    out = esm1_layernorm(x, weight, bias, hidden_size=hidden, eps=eps, affine=True)
    out = jax.block_until_ready(out)
    ref = _reference_layernorm(x, weight, bias, hidden, eps, True)
    assert out.shape == x.shape
    assert jnp.allclose(out, ref, atol=1e-5, rtol=1e-5), "affine mismatch"

    # affine=False path (no weight/bias inputs in the pallas_call at all)
    out2 = jax.block_until_ready(
        esm1_layernorm(x, None, None, hidden_size=hidden, eps=eps, affine=False))
    ref2 = _reference_layernorm(x, None, None, hidden, eps, False)
    assert jnp.allclose(out2, ref2, atol=1e-5, rtol=1e-5), "no-affine mismatch"

    # tuple hidden_size + row count not a multiple of 8 -> exercises ragged grid
    hs = (4, 32)                      # H = 128
    x3 = jax.random.normal(key, (3, 5) + hs, dtype=jnp.float32)   # rows = 15
    w3 = jnp.ones(hs, jnp.float32) + 0.05 * jax.random.normal(kw, hs, jnp.float32)
    b3 = 0.05 * jax.random.normal(kb, hs, jnp.float32)
    out3 = jax.block_until_ready(
        esm1_layernorm(x3, w3, b3, hidden_size=hs, eps=eps, affine=True))
    ref3 = _reference_layernorm(x3, w3, b3, hs, eps, True)
    assert jnp.allclose(out3, ref3, atol=1e-5, rtol=1e-5), "ragged-grid mismatch"

    # bf16 path: packed bf16 affine (looser tolerance, bf16 precision)
    xb = jax.random.normal(kx, (4, 16, 256), dtype=jnp.float32).astype(jnp.bfloat16)
    wb = (jnp.ones((256,), jnp.float32)
          + 0.1 * jax.random.normal(kw, (256,), jnp.float32)).astype(jnp.bfloat16)
    bb = (0.1 * jax.random.normal(kb, (256,), jnp.float32)).astype(jnp.bfloat16)
    outb = jax.block_until_ready(
        esm1_layernorm(xb, wb, bb, hidden_size=256, eps=eps, affine=True))
    refb = _reference_layernorm(xb, wb, bb, 256, eps, True)
    assert jnp.allclose(outb.astype(jnp.float32), refb.astype(jnp.float32),
                        atol=1e-1, rtol=5e-2), "bf16 mismatch"

    # larger f32 case that exercises the multi-step parallel grid
    x5 = jax.random.normal(kx, (64, 64, 128), dtype=jnp.float32)   # rows = 4096
    out5 = jax.block_until_ready(
        esm1_layernorm(x5, weight, bias, hidden_size=128, eps=eps, affine=True))
    ref5 = _reference_layernorm(x5, weight, bias, 128, eps, True)
    assert jnp.allclose(out5, ref5, atol=1e-5, rtol=1e-5), "multi-step mismatch"

    # tiny hidden (H=32) -> lane-sparse guard falls back to pure-JAX path
    x4 = jax.random.normal(kx, (2, 8, 32), dtype=jnp.float32)
    w4 = jnp.ones((32,), jnp.float32)
    b4 = jnp.zeros((32,), jnp.float32)
    out4 = jax.block_until_ready(
        esm1_layernorm(x4, w4, b4, hidden_size=32, eps=eps, affine=True))
    ref4 = _reference_layernorm(x4, w4, b4, 32, eps, True)
    assert jnp.allclose(out4, ref4, atol=1e-5, rtol=1e-5), "small-H mismatch"

    print("KERNEL_OK")
</pallas_src>

<mosaic_0001>
module attributes {stable_mosaic.version = 11 : i64} {
  func.func @_ln_kernel_affine(%arg0: i32, %arg1: memref<16x128xf32, #tpu.memory_space<vmem>>, %arg2: memref<1x128xf32, #tpu.memory_space<vmem>>, %arg3: memref<1x128xf32, #tpu.memory_space<vmem>>, %arg4: memref<16x128xf32, #tpu.memory_space<vmem>>) attributes {dimension_semantics = [#tpu.dimension_semantics<parallel>], iteration_bounds = array<i64: 1>, scalar_prefetch = 0 : i64, scratch_operands = 0 : i64, tpu.core_type = #tpu.core_type<tc>, window_params = [{transform_indices = @transform_0, window_bounds = array<i64: 16, 128>}, {pipeline_mode = #tpu.pipeline_mode<synchronous>, transform_indices = @transform_1, window_bounds = array<i64: 1, 128>}, {pipeline_mode = #tpu.pipeline_mode<synchronous>, transform_indices = @transform_2, window_bounds = array<i64: 1, 128>}, {transform_indices = @transform_3, window_bounds = array<i64: 16, 128>}]} {
    %c0 = arith.constant 0 : index
    %c0_0 = arith.constant 0 : index
    %0 = vector.load %arg1[%c0, %c0_0] : memref<16x128xf32, #tpu.memory_space<vmem>>, vector<16x128xf32>
    %cst = arith.constant dense<0.000000e+00> : vector<16xf32>
    %1 = vector.multi_reduction <add>, %0, %cst [1] : vector<16x128xf32> to vector<16xf32>
    %2 = vector.shape_cast %1 : vector<16xf32> to vector<16x1xf32>
    %cst_1 = arith.constant 1.280000e+02 : f32
    %3 = vector.broadcast %cst_1 : f32 to vector<16x1xf32>
    %4 = arith.divf %2, %3 : vector<16x1xf32>
    %5 = vector.broadcast %4 : vector<16x1xf32> to vector<16x128xf32>
    %6 = arith.subf %0, %5 : vector<16x128xf32>
    %7 = arith.mulf %6, %6 : vector<16x128xf32>
    %cst_2 = arith.constant dense<0.000000e+00> : vector<16xf32>
    %8 = vector.multi_reduction <add>, %7, %cst_2 [1] : vector<16x128xf32> to vector<16xf32>
    %9 = vector.shape_cast %8 : vector<16xf32> to vector<16x1xf32>
    %cst_3 = arith.constant 1.280000e+02 : f32
    %10 = vector.broadcast %cst_3 : f32 to vector<16x1xf32>
    %11 = arith.divf %9, %10 : vector<16x1xf32>
    %cst_4 = arith.constant 9.99999996E-13 : f32
    %12 = vector.broadcast %cst_4 : f32 to vector<16x1xf32>
    %13 = arith.addf %11, %12 : vector<16x1xf32>
    %14 = math.rsqrt %13 : vector<16x1xf32>
    %15 = vector.broadcast %14 : vector<16x1xf32> to vector<16x128xf32>
    %16 = arith.mulf %6, %15 : vector<16x128xf32>
    %c0_5 = arith.constant 0 : index
    %c0_6 = arith.constant 0 : index
    %17 = vector.load %arg2[%c0_5, %c0_6] : memref<1x128xf32, #tpu.memory_space<vmem>>, vector<1x128xf32>
    %18 = vector.broadcast %17 : vector<1x128xf32> to vector<16x128xf32>
    %19 = arith.mulf %18, %16 : vector<16x128xf32>
    %c0_7 = arith.constant 0 : index
    %c0_8 = arith.constant 0 : index
    %20 = vector.load %arg3[%c0_7, %c0_8] : memref<1x128xf32, #tpu.memory_space<vmem>>, vector<1x128xf32>
    %21 = vector.broadcast %20 : vector<1x128xf32> to vector<16x128xf32>
    %22 = arith.addf %19, %21 : vector<16x128xf32>
    %c0_9 = arith.constant 0 : index
    %c0_10 = arith.constant 0 : index
    %23 = vector.load %arg4[%c0_9, %c0_10] : memref<16x128xf32, #tpu.memory_space<vmem>>, vector<16x128xf32>
    tpu.vector_store %arg4[%c0_9, %c0_10], %22 {strides = array<i32>} : memref<16x128xf32, #tpu.memory_space<vmem>>, vector<16x128xf32>,
    return
  }
  func.func @transform_0(%arg0: i32) -> (i32, i32) {
    %c0_i32 = arith.constant 0 : i32
    %c0_i32_0 = arith.constant 0 : i32
    return %arg0, %c0_i32 : i32, i32
  }
  func.func @transform_1(%arg0: i32) -> (i32, i32) {
    %c0_i32 = arith.constant 0 : i32
    %c0_i32_0 = arith.constant 0 : i32
    %c0_i32_1 = arith.constant 0 : i32
    return %c0_i32, %c0_i32_0 : i32, i32
  }
  func.func @transform_2(%arg0: i32) -> (i32, i32) {
    %c0_i32 = arith.constant 0 : i32
    %c0_i32_0 = arith.constant 0 : i32
    %c0_i32_1 = arith.constant 0 : i32
    return %c0_i32, %c0_i32_0 : i32, i32
  }
  func.func @transform_3(%arg0: i32) -> (i32, i32) {
    %c0_i32 = arith.constant 0 : i32
    %c0_i32_0 = arith.constant 0 : i32
    return %arg0, %c0_i32 : i32, i32
  }
}

</mosaic_0001>

<bundles_post_ra>
// kernel: tpu_custom_call.1
= control target key start
LH: loop header
LB: loop body
LE: loop exit
PB: predicated region body
PF: predicated region fallthrough
CT: control target
= control target key end

     0   :  { %8 = vsyncpa [#allocation3], 0  ;;  %s264_s0 = inlined_call_operand.hbm [shape: f32[16,128], index: 0, kind: input, shape index: {}]   ;;  %s265_s1 = inlined_call_operand.hbm [shape: f32[1,128], index: 1, kind: input, shape index: {}]   ;;  %s266_s2 = inlined_call_operand.vmem [shape: f32[1,128], index: 2, kind: input, shape index: {}]   ;;  %s267_s3 = inlined_call_operand.hbm [shape: f32[16,128], index: 3, kind: output, shape index: {}]  }
   0x1   :  { %9 = vsyncpa [#allocation6], 0 }
   0x2   :  { %10 = vsyncpa [#allocation4], 0  ;;  %s15_s14 = sshll.u32 %s264_s0, 4  ;;  %s220_s15 = smov [#allocation2]   ;;  %s16_s14 = int_to_ptr.hbm [resolvable:$true] %s15_s14 }
   0x3   :  { %s17_s16 = sshll.u32 %s220_s15, 4  ;;  %s29_s19 = sshll.u32 %s265_s1, 4  ;;  %s18_s16 = int_to_ptr.vmem [resolvable:$true] %s17_s16  ;;  %s30_s19 = int_to_ptr.hbm [resolvable:$true] %s29_s19 }
   0x4   :  { %s221_s20 = smov 128   ;;  %s222_s21 = smov 8  }
   0x5   :  { %23 = dma.hbm_to_vmem [thread:$0]  %s16_s14, 256, %s18_s16, [#allocation3], %s221_s20, %s221_s20, %s222_s21  }
   0x6   :  { %s223_s22 = smov [#allocation5]  }
   0x7   :  { %s31_s23 = sshll.u32 %s223_s22, 4  ;;  %s32_s23 = int_to_ptr.vmem [resolvable:$true] %s31_s23 }
   0x8   :  { %34 = dma.hbm_to_vmem [thread:$0]  %s30_s19, 16, %s32_s23, [#allocation6]  }
   0x9   :  { %214 = dma.done.wait [#allocation3], 256  }
   0xa   :  { %215 = vsyncadd [#allocation3], 4294967040 }
   0xb   :  { %216 = dma.done.wait [#allocation6], 16  }
   0xc   :  { %217 = vsyncadd [#allocation6], 4294967280  ;;  %v45_v0 = vld [vmem:[#allocation2] sm:$0xff]  ;;  %v46_v1 = vld [vmem:[#allocation2 + $0x8] sm:$0xff]  ;;  %v224_v2 = vmov 128.0   ;;  %s225_s24 = smov [#allocation7]  }
   0xd   :  { %47 = vadd.xlane.f32.xlu0 %v45_v0  ;;  %136 = vrcp.f32 %v224_v2  ;;  %v134_v31 = vld [vmem:[#allocation5] ss:$0 sm:$0xff]  ;;  %v135_v35 = vld [vmem:[%s266_s2] ss:$0 sm:$0xff]  ;;  %s112_s25 = sshll.u32 %s225_s24, 4  ;;  %s114_s28 = sshll.u32 %s267_s3, 4  ;;  %s113_s25 = int_to_ptr.vmem [resolvable:$true] %s112_s25  ;;  %s115_s28 = int_to_ptr.hbm [resolvable:$true] %s114_s28 }
  0x13   :  { %v137_v3 = vpop.eup %136 }
  0x14   :  { %v52_v4 = vmul.f32 128.0, %v137_v3  ;;  %vm56_vm0 = vweird.f32 %v137_v3 }
  0x15   :  { %49 = vadd.xlane.f32.xlu0 %v46_v1 }
  0x16   :  { %v53_v5 = vsub.f32 1.0, %v52_v4 }
  0x18   :  { %v54_v6 = vmul.f32 %v137_v3, %v53_v5 }
  0x1a   :  { %v55_v7 = vadd.f32 %v137_v3, %v54_v6 }
  0x1c   :  { %v57_v8 = vsel %vm56_vm0, %v137_v3, %v55_v7 }
  0x80   :  { %v48_v9 = vpop.xlane.xlu0 %47 }
  0x81   :  { %v58_v10 = vmul.f32 %v57_v8, %v48_v9 }
  0x83   :  { %v60_v11 = vsub.f32 %v45_v0, %v58_v10 }
  0x85   :  { %v62_v12 = vmul.f32 %v60_v11, %v60_v11 }
  0x87   :  { %64 = vadd.xlane.f32.xlu1 %v62_v12 }
  0x88   :  { %v50_v13 = vpop.xlane.xlu0 %49 }
  0x89   :  { %v59_v14 = vmul.f32 %v57_v8, %v50_v13 }
  0x8b   :  { %v61_v15 = vsub.f32 %v46_v1, %v59_v14 }
  0x8d   :  { %v63_v16 = vmul.f32 %v61_v15, %v61_v15 }
  0x8f   :  { %66 = vadd.xlane.f32.xlu1 %v63_v16 }
  0xfa   :  { %v65_v17 = vpop.xlane.xlu1 %64 }
  0xfb   :  { %v68_v18 = vmul.f32 %v65_v17, %v57_v8 }
  0xfd   :  { %v70_v19 = vadd.f32 1e-12, %v68_v18 }
  0xff   :  { %138 = vrsqrt.f32 %v70_v19  ;;  %vm78_vm2 = vweird.f32 %v70_v19 }
 0x102   :  { %v67_v20 = vpop.xlane.xlu1 %66 }
 0x103   :  { %v69_v21 = vmul.f32 %v67_v20, %v57_v8 }
 0x105   :  { %v139_v22 = vpop.eup %138  ;;  %v71_v23 = vadd.f32 1e-12, %v69_v21 }
 0x106   :  { %v73_v24 = vmul.f32 %v139_v22, %v70_v19  ;;  %vm79_vm1 = vweird.f32 %v139_v22 }
 0x107   :  { %140 = vrsqrt.f32 %v71_v23  ;;  %vm80_vm3 = vmor %vm78_vm2, %vm79_vm1  ;;  %vm88_vm5 = vweird.f32 %v71_v23 }
 0x108   :  { %v74_v25 = vmul.f32 %v139_v22, %v73_v24 }
 0x10a   :  { %v75_v26 = vmul.f32 0.5, %v74_v25 }
 0x10c   :  { %v76_v27 = vsub.f32 1.5, %v75_v26 }
 0x10d   :  { %v141_v28 = vpop.eup %140 }
 0x10e   :  { %v77_v29 = vmul.f32 %v139_v22, %v76_v27  ;;  %v83_v30 = vmul.f32 %v141_v28, %v71_v23  ;;  %vm89_vm4 = vweird.f32 %v141_v28 }
 0x10f   :  { %vm90_vm6 = vmor %vm88_vm5, %vm89_vm4 }
 0x110   :  { %v81_v32 = vsel %vm80_vm3, %v139_v22, %v77_v29  ;;  %v84_v33 = vmul.f32 %v141_v28, %v83_v30 }
 0x111   :  { %v92_v34 = vmul.f32 %v81_v32, %v60_v11 }
 0x112   :  { %v85_v36 = vmul.f32 0.5, %v84_v33 }
 0x113   :  { %v98_v37 = vmul.f32 %v134_v31, %v92_v34 }
 0x114   :  { %v86_v38 = vsub.f32 1.5, %v85_v36 }
 0x115   :  { %v104_v39 = vadd.f32 %v135_v35, %v98_v37 }
 0x116   :  { %v87_v40 = vmul.f32 %v141_v28, %v86_v38 }
 0x117   :  { %106 = vst [vmem:[#allocation7] sm:$0xff] %v104_v39 }
 0x118   :  { %v91_v41 = vsel %vm90_vm6, %v141_v28, %v87_v40 }
 0x119   :  { %v93_v42 = vmul.f32 %v91_v41, %v61_v15 }
 0x11b   :  { %v99_v43 = vmul.f32 %v134_v31, %v93_v42 }
 0x11d   :  { %v105_v44 = vadd.f32 %v135_v35, %v99_v43 }
 0x11f   :  { %107 = vst [vmem:[#allocation7 + $0x8] sm:$0xff] %v105_v44 }
 0x120   :  { %120 = dma.vmem_to_hbm [thread:$0]  %s113_s25, 256, %s115_s28, [#allocation4], %s221_s20, %s221_s20, %s222_s21  }
 0x121   :  { %218 = dma.done.wait [#allocation4], 256  }
 0x122   :  { %219 = vsyncadd [#allocation4], 4294967040 }
 0x123   :  { %125 = vsyncpa [#allocation3], 1 }
 0x124   :  { %126 = vsyncpa [#allocation6], 1 }
 0x125   :  { %127 = vsyncpa [#allocation4], 1 }

</bundles_post_ra>
